<compile_context>
chip_gen: v7x
topology: tpu7x:2x2x1
jax: 0.10.0
libtpu: 0.0.40
codegen_flags: <defaults>
</compile_context>

<pallas_src>
import functools

import jax
import jax.numpy as jnp
from jax.experimental import pallas as pl
from jax.experimental.pallas import tpu as pltpu


# Tile targets. Double-buffered f32 working set at (512, 512, 1024):
#   2*(tm*tk + tk*tn)*4B + 2*tm*tn*4B + tm*tn*4B ~= 11 MiB (+2 MiB when the
# weight stream is triple-buffered) -> fits scoped-VMEM defaults everywhere.
# TODO(synk): per-generation sweeps (pltpu.get_tpu_info) could push v5e/v6e to
# 1024-class tiles with vmem_limit_bytes raised; not required for correctness.
_TM_TARGET = 512    # rows of x / out (sublane axis)
_TN_TARGET = 512    # output columns (lane axis)
_TK_TARGET = 1024   # contraction (in_features)


def _pick_tile(dim, target, align):
    """Largest legal block size <= target for this dim.

    Full extent if the dim already fits (always layout-legal); otherwise the
    largest `align`-multiple divisor of dim; otherwise an aligned `target`
    tile with a ragged last block (the reduction axis is masked in-kernel)."""
    if dim <= target:
        return dim
    top = max((target // align) * align, align)
    for cand in range(top, align - 1, -align):
        if dim % cand == 0:
            return cand
    return top


def _matmul_bias_kernel(x_ref, w_ref, b_ref, o_ref, acc_ref, *, k_total, tk):
    """One (e, i, j) output tile; K streamed over the last grid axis.

    x_ref: (1, tm, tk), w_ref: (1, tk, tn), b_ref: (1, 1, tn),
    o_ref: (1, tm, tn), acc_ref: (tm, tn) f32 scratch.
    """
    k = pl.program_id(3)

    @pl.when(k == 0)
    def _():
        acc_ref[...] = jnp.zeros_like(acc_ref)

    x = x_ref[0]
    w = w_ref[0]
    if k_total % tk != 0:
        # Ragged last K block: out-of-bounds input values are unspecified, so
        # mask both operands before they reach the accumulator.  (Static
        # Python branch -- only compiled in when K really is ragged.)
        rem = k_total - k * tk
        x = jnp.where(jax.lax.broadcasted_iota(jnp.int32, x.shape, 1) < rem, x, 0)
        w = jnp.where(jax.lax.broadcasted_iota(jnp.int32, w.shape, 0) < rem, w, 0)

    acc_ref[...] += jnp.dot(x, w, preferred_element_type=jnp.float32)

    @pl.when(k == pl.num_programs(3) - 1)
    def _():
        o_ref[0] = (acc_ref[...] + b_ref[0].astype(jnp.float32)).astype(o_ref.dtype)


def _batched_matmul_bias(x3, w3, b3, out_dtype, broadcast_x):
    """out[e] = x3[0 if broadcast_x else e] @ w3[e] + b3[e]  -> (E, N, Np)."""
    _, n, k_total = x3.shape
    e, _, np_ = w3.shape

    tm = _pick_tile(n, _TM_TARGET, 8)
    tn = _pick_tile(np_, _TN_TARGET, 128)
    tk = _pick_tile(k_total, _TK_TARGET, 128)
    gi, gj, gk = pl.cdiv(n, tm), pl.cdiv(np_, tn), pl.cdiv(k_total, tk)

    if broadcast_x:
        x_map = lambda e_, i, j, kk: (0, i, kk)
    else:
        x_map = lambda e_, i, j, kk: (e_, i, kk)

    # Deepen prefetch on the K-streamed weight operand only when the K grid is
    # long enough for exposed DMA to matter (each extra buffer is tk*tn bytes).
    w_extra = dict(pipeline_mode=pl.Buffered(3)) if gk >= 4 else {}

    kernel = functools.partial(_matmul_bias_kernel, k_total=k_total, tk=tk)

    return pl.pallas_call(
        kernel,
        out_shape=jax.ShapeDtypeStruct((e, n, np_), out_dtype),
        grid=(e, gi, gj, gk),
        in_specs=[
            pl.BlockSpec((1, tm, tk), x_map),
            pl.BlockSpec((1, tk, tn), lambda e_, i, j, kk: (e_, kk, j), **w_extra),
            pl.BlockSpec((1, 1, tn), lambda e_, i, j, kk: (e_, 0, j)),
        ],
        out_specs=pl.BlockSpec((1, tm, tn), lambda e_, i, j, kk: (e_, i, j)),
        scratch_shapes=[pltpu.VMEM((tm, tn), jnp.float32)],
        compiler_params=pltpu.CompilerParams(
            dimension_semantics=("parallel", "parallel", "parallel", "arbitrary")),
    )(x3, w3, b3)


def _forward_2d(x, weight, bias, out_dtype):
    n, k = x.shape
    e, _, out_features = weight.shape

    # Small-output specialisation: out < 128 would leave masked vst.msk
    # partial stores and E tiny under-filled MXU matmuls.  Fold the ensemble
    # dim into the lane axis and pad to a multiple of 128 (lane-dense stores,
    # one wide matmul); gated so the fold copy stays trivially small.
    if out_features < 128 and e * k * out_features <= (1 << 22):
        m = e * out_features
        m_pad = -(-m // 128) * 128
        w_flat = jnp.transpose(weight, (1, 0, 2)).reshape(k, m)
        b_flat = bias.reshape(1, m)
        if m_pad != m:
            w_flat = jnp.pad(w_flat, ((0, 0), (0, m_pad - m)))
            b_flat = jnp.pad(b_flat, ((0, 0), (0, m_pad - m)))
        y = _batched_matmul_bias(x[None], w_flat[None], b_flat[None],
                                 out_dtype, broadcast_x=True)       # (1, N, m_pad)
        y = y[0, :, :m].reshape(n, e, out_features)
        return jnp.transpose(y, (1, 0, 2))

    # General path: read the original (E, in, out) weight in place and write
    # the (E, N, out) result directly from the kernel (no HBM round trips).
    return _batched_matmul_bias(x[None], weight, bias, out_dtype, broadcast_x=True)


def _forward_3d(x, weight, bias, out_dtype):
    # TODO(synk): for tiny per-member (N, out) tiles the E matmuls under-fill
    # the MXU; a block-diagonal lane-folded variant would fix that but costs
    # E x the weight bytes, so it is intentionally not done here.
    return _batched_matmul_bias(x, weight, bias, out_dtype, broadcast_x=False)


def ensemble_linear(x, weight, bias, select=None, compute_dtype=None):
    """Pallas implementation of EnsembleLinear.forward.

    x:      (N, in) or (E_sel, N, in)
    weight: (E, in, out); bias: (E, 1, out)
    select: optional list of ensemble indices (the module's `self.select`)
    compute_dtype: optional MXU operand dtype (e.g. jnp.bfloat16); accumulator,
        bias add and output dtype stay in the original input precision.
    returns (E_sel, N, out)
    """
    if select is not None:
        idx = jnp.asarray(select, dtype=jnp.int32)
        weight = weight[idx]
        bias = bias[idx]

    e, in_features, _ = weight.shape
    out_dtype = x.dtype
    if compute_dtype is not None:
        x = x.astype(compute_dtype)
        weight = weight.astype(compute_dtype)

    if x.ndim == 2:
        assert x.shape[1] == in_features
        return _forward_2d(x, weight, bias, out_dtype)
    if x.ndim == 3:
        assert x.shape[0] == e and x.shape[2] == in_features
        return _forward_3d(x, weight, bias, out_dtype)
    raise ValueError("x must be 2D or 3D")


if __name__ == "__main__":
    # Small shapes consistent with the module: ensemble_size=7, in=32, out=32, batch=8.
    E, IN, OUT, N = 7, 32, 32, 8
    key = jax.random.PRNGKey(0)
    k_w, k_b, k_x2, k_x3, k_w2, k_b2 = jax.random.split(key, 6)

    # Module zero-inits; use random values so the kernel exercises a real matmul.
    weight = jax.random.normal(k_w, (E, IN, OUT), dtype=jnp.float32) * 0.1
    bias = jax.random.normal(k_b, (E, 1, OUT), dtype=jnp.float32) * 0.1
    x2 = jax.random.normal(k_x2, (N, IN), dtype=jnp.float32)
    x3 = jax.random.normal(k_x3, (E, N, IN), dtype=jnp.float32)

    # 1) 2D input, small out -> lane-folded + 128-padded path.
    out = jax.block_until_ready(ensemble_linear(x2, weight, bias))
    ref = jnp.einsum("ij,bjk->bik", x2, weight) + bias
    assert out.shape == (E, N, OUT)
    assert jnp.allclose(out, ref, atol=1e-4, rtol=1e-4)

    # 2) 3D input -> direct batched path (E-blocked grid).
    out = jax.block_until_ready(ensemble_linear(x3, weight, bias))
    ref = jnp.einsum("bij,bjk->bik", x3, weight) + bias
    assert out.shape == (E, N, OUT)
    assert jnp.allclose(out, ref, atol=1e-4, rtol=1e-4)

    # 3) 2D input, lane-wide out -> direct path (in-place weight read,
    #    direct (E, N, out) store, no wrapper fold/transpose).
    OUT_WIDE = 128
    weight_w = jax.random.normal(k_w2, (E, IN, OUT_WIDE), dtype=jnp.float32) * 0.1
    bias_w = jax.random.normal(k_b2, (E, 1, OUT_WIDE), dtype=jnp.float32) * 0.1
    out = jax.block_until_ready(ensemble_linear(x2, weight_w, bias_w))
    ref = jnp.einsum("ij,bjk->bik", x2, weight_w) + bias_w
    assert out.shape == (E, N, OUT_WIDE)
    assert jnp.allclose(out, ref, atol=1e-4, rtol=1e-4)

    # 4) set_select semantics: subset of ensemble members.
    sel = [0, 2, 5]
    sel_idx = jnp.asarray(sel)
    out = jax.block_until_ready(ensemble_linear(x2, weight, bias, select=sel))
    ref = jnp.einsum("ij,bjk->bik", x2, weight[sel_idx]) + bias[sel_idx]
    assert out.shape == (len(sel), N, OUT)
    assert jnp.allclose(out, ref, atol=1e-4, rtol=1e-4)

    # 5) bf16 MXU operands with f32 accumulation (looser tolerance, f32 output).
    out = jax.block_until_ready(
        ensemble_linear(x2, weight_w, bias_w, compute_dtype=jnp.bfloat16))
    ref = jnp.einsum("ij,bjk->bik", x2, weight_w) + bias_w
    assert out.dtype == jnp.float32
    assert jnp.allclose(out, ref, atol=5e-2, rtol=5e-2)

    print("KERNEL_OK")
</pallas_src>

<mosaic_0001>
module attributes {stable_mosaic.version = 11 : i64} {
  func.func @_matmul_bias_kernel(%arg0: i32, %arg1: i32, %arg2: i32, %arg3: i32, %arg4: memref<1x8x32xf32, #tpu.memory_space<vmem>>, %arg5: memref<1x32x256xf32, #tpu.memory_space<vmem>>, %arg6: memref<1x1x256xf32, #tpu.memory_space<vmem>>, %arg7: memref<1x8x256xf32, #tpu.memory_space<vmem>>, %arg8: memref<8x256xf32, #tpu.memory_space<vmem>>) attributes {dimension_semantics = [#tpu.dimension_semantics<parallel>, #tpu.dimension_semantics<parallel>, #tpu.dimension_semantics<parallel>, #tpu.dimension_semantics<arbitrary>], iteration_bounds = array<i64: 1, 1, 1, 1>, scalar_prefetch = 0 : i64, scratch_operands = 1 : i64, tpu.core_type = #tpu.core_type<tc>, window_params = [{transform_indices = @transform_0, window_bounds = array<i64: 1, 8, 32>}, {transform_indices = @transform_1, window_bounds = array<i64: 1, 32, 256>}, {transform_indices = @transform_2, window_bounds = array<i64: 1, 1, 256>}, {transform_indices = @transform_3, window_bounds = array<i64: 1, 8, 256>}]} {
    %c0_i32 = arith.constant 0 : i32
    %0 = arith.cmpi eq, %arg3, %c0_i32 : i32
    %1 = arith.extui %0 : i1 to i32
    %c0_i32_0 = arith.constant 0 : i32
    %2 = arith.cmpi ne, %1, %c0_i32_0 : i32
    scf.if %2 {
      %cst_12 = arith.constant 0.000000e+00 : f32
      %14 = vector.broadcast %cst_12 : f32 to vector<8x256xf32>
      %c0_13 = arith.constant 0 : index
      %c0_14 = arith.constant 0 : index
      %15 = vector.load %arg8[%c0_13, %c0_14] : memref<8x256xf32, #tpu.memory_space<vmem>>, vector<8x256xf32>
      tpu.vector_store %arg8[%c0_13, %c0_14], %14 {strides = array<i32>} : memref<8x256xf32, #tpu.memory_space<vmem>>, vector<8x256xf32>,
    } else {
    }
    %c0 = arith.constant 0 : index
    %c0_1 = arith.constant 0 : index
    %c0_2 = arith.constant 0 : index
    %3 = vector.load %arg4[%c0, %c0_1, %c0_2] : memref<1x8x32xf32, #tpu.memory_space<vmem>>, vector<1x8x32xf32>
    %4 = vector.shape_cast %3 : vector<1x8x32xf32> to vector<8x32xf32>
    %c0_3 = arith.constant 0 : index
    %c0_4 = arith.constant 0 : index
    %c0_5 = arith.constant 0 : index
    %5 = vector.load %arg5[%c0_3, %c0_4, %c0_5] : memref<1x32x256xf32, #tpu.memory_space<vmem>>, vector<1x32x256xf32>
    %6 = vector.shape_cast %5 : vector<1x32x256xf32> to vector<32x256xf32>
    %c0_6 = arith.constant 0 : index
    %c0_7 = arith.constant 0 : index
    %7 = vector.load %arg8[%c0_6, %c0_7] : memref<8x256xf32, #tpu.memory_space<vmem>>, vector<8x256xf32>
    %cst = arith.constant dense<0.000000e+00> : vector<8x256xf32>
    %8 = tpu.matmul %4, %6, %cst {dimension_numbers = #tpu.dot_dimension_numbers<[1], [0], [0], [1], [0, 0, 1, 1], [], []>} : vector<8x32xf32>, vector<32x256xf32>, vector<8x256xf32> -> vector<8x256xf32>
    %9 = arith.addf %7, %8 : vector<8x256xf32>
    %c0_8 = arith.constant 0 : index
    %c0_9 = arith.constant 0 : index
    %10 = vector.load %arg8[%c0_8, %c0_9] : memref<8x256xf32, #tpu.memory_space<vmem>>, vector<8x256xf32>
    tpu.vector_store %arg8[%c0_8, %c0_9], %9 {strides = array<i32>} : memref<8x256xf32, #tpu.memory_space<vmem>>, vector<8x256xf32>,
    %c0_i32_10 = arith.constant 0 : i32
    %11 = arith.cmpi eq, %arg3, %c0_i32_10 : i32
    %12 = arith.extui %11 : i1 to i32
    %c0_i32_11 = arith.constant 0 : i32
    %13 = arith.cmpi ne, %12, %c0_i32_11 : i32
    scf.if %13 {
      %c0_12 = arith.constant 0 : index
      %c0_13 = arith.constant 0 : index
      %14 = vector.load %arg8[%c0_12, %c0_13] : memref<8x256xf32, #tpu.memory_space<vmem>>, vector<8x256xf32>
      %c0_14 = arith.constant 0 : index
      %c0_15 = arith.constant 0 : index
      %c0_16 = arith.constant 0 : index
      %15 = vector.load %arg6[%c0_14, %c0_15, %c0_16] : memref<1x1x256xf32, #tpu.memory_space<vmem>>, vector<1x1x256xf32>
      %16 = vector.shape_cast %15 : vector<1x1x256xf32> to vector<1x256xf32>
      %17 = vector.broadcast %16 : vector<1x256xf32> to vector<8x256xf32>
      %18 = arith.addf %14, %17 : vector<8x256xf32>
      %c0_17 = arith.constant 0 : index
      %c0_18 = arith.constant 0 : index
      %c0_19 = arith.constant 0 : index
      %19 = vector.load %arg7[%c0_17, %c0_18, %c0_19] : memref<1x8x256xf32, #tpu.memory_space<vmem>>, vector<1x8x256xf32>
      %20 = vector.shape_cast %19 : vector<1x8x256xf32> to vector<8x256xf32>
      %21 = vector.shape_cast %18 : vector<8x256xf32> to vector<1x8x256xf32>
      tpu.vector_store %arg7[%c0_17, %c0_18, %c0_19], %21 {strides = array<i32>} : memref<1x8x256xf32, #tpu.memory_space<vmem>>, vector<1x8x256xf32>,
    } else {
    }
    return
  }
  func.func @transform_0(%arg0: i32, %arg1: i32, %arg2: i32, %arg3: i32) -> (i32, i32, i32) {
    %c0_i32 = arith.constant 0 : i32
    %c0_i32_0 = arith.constant 0 : i32
    return %c0_i32, %arg1, %arg3 : i32, i32, i32
  }
  func.func @transform_1(%arg0: i32, %arg1: i32, %arg2: i32, %arg3: i32) -> (i32, i32, i32) {
    %c0_i32 = arith.constant 0 : i32
    return %arg0, %arg3, %arg2 : i32, i32, i32
  }
  func.func @transform_2(%arg0: i32, %arg1: i32, %arg2: i32, %arg3: i32) -> (i32, i32, i32) {
    %c0_i32 = arith.constant 0 : i32
    %c0_i32_0 = arith.constant 0 : i32
    return %arg0, %c0_i32, %arg2 : i32, i32, i32
  }
  func.func @transform_3(%arg0: i32, %arg1: i32, %arg2: i32, %arg3: i32) -> (i32, i32, i32) {
    %c0_i32 = arith.constant 0 : i32
    return %arg0, %arg1, %arg2 : i32, i32, i32
  }
}

</mosaic_0001>

<bundles_post_ra>
// kernel: tpu_custom_call.1
= control target key start
LH: loop header
LB: loop body
LE: loop exit
PB: predicated region body
PF: predicated region fallthrough
CT: control target
= control target key end

     0   :  { %8 = vsyncpa [#allocation4], 0  ;;  %s333_s0 = inlined_call_operand.hbm [shape: f32[1,8,32], index: 0, kind: input, shape index: {}]   ;;  %s334_s1 = inlined_call_operand.hbm [shape: f32[1,32,256], index: 1, kind: input, shape index: {}]   ;;  %s335_s2 = inlined_call_operand.vmem [shape: f32[1,1,256], index: 2, kind: input, shape index: {}]   ;;  %s336_s3 = inlined_call_operand.hbm [shape: f32[1,8,256], index: 3, kind: output, shape index: {}]  }
   0x1   :  { %9 = vsyncpa [#allocation7], 0 }
   0x2   :  { %10 = vsyncpa [#allocation5], 0  ;;  %s261_s12 = smov [#allocation3]   ;;  %s262_s14 = smov [#allocation6]  }
   0x3   :  { %s17_s13 = sshll.u32 %s261_s12, 4  ;;  %s26_s15 = sshll.u32 %s262_s14, 4  ;;  %s18_s13 = int_to_ptr.vmem [resolvable:$true] %s17_s13  ;;  %s287_s15 = int_to_ptr.vmem [resolvable:$true] %s26_s15 }
   0x4   :  { %s189_s18 = scalar_lea.hbm %s333_s0, 128 }
   0x5   :  { %p190_p0 = scmp.ne.s32.totalorder %s333_s0, %s189_s18  ;;  %p193_p1 = scmp.lt.u32.totalorder %s189_s18, %s333_s0 }
   0x7   :  { %p195_p2 = pnand %p193_p1, %p190_p0 }
   0x9   :  { %198 = shalt.err (!%p195_p2)
}
   0xa   :  { %s199_s23 = scalar_lea.vmem %s18_s13, 128  ;;  %p204_p4 = scmp.lt.s32.totalorder %s18_s13, %s18_s13 }
   0xb   :  { %p200_p3 = scmp.ne.s32.totalorder %s18_s13, %s199_s23  ;;  %p205_p5 = scmp.lt.s32.totalorder %s199_s23, %s199_s23 }
   0xd   :  { %p206_p6 = por %p205_p5, %p204_p4 }
   0xf   :  { %p207_p7 = pnand %p206_p6, %p200_p3 }
  0x11   :  { %210 = shalt.err (!%p207_p7)
}
  0x12   :  { %20 = dma.hbm_to_vmem [thread:$0]  %s333_s0, 128, %s18_s13, [#allocation4]  }
  0x13   :  { %s211_s28 = scalar_lea.hbm %s334_s1, 1024 }
  0x14   :  { %p212_p8 = scmp.ne.s32.totalorder %s334_s1, %s211_s28  ;;  %p215_p9 = scmp.lt.u32.totalorder %s211_s28, %s334_s1 }
  0x16   :  { %p217_p10 = pnand %p215_p9, %p212_p8 }
  0x18   :  { %220 = shalt.err (!%p217_p10)
}
  0x19   :  { %s221_s6 = scalar_lea.vmem %s287_s15, 1024  ;;  %p226_p12 = scmp.lt.s32.totalorder %s287_s15, %s287_s15 }
  0x1a   :  { %p222_p11 = scmp.ne.s32.totalorder %s287_s15, %s221_s6  ;;  %p227_p13 = scmp.lt.s32.totalorder %s221_s6, %s221_s6 }
  0x1c   :  { %p228_p0 = por %p227_p13, %p226_p12 }
  0x1e   :  { %p229_p1 = pnand %p228_p0, %p222_p11 }
  0x20   :  { %232 = shalt.err (!%p229_p1)
}
  0x21   :  { %s263_s0 = smov 256   ;;  %s264_s7 = smov 16  }
  0x22   :  { %32 = dma.hbm_to_vmem [thread:$0]  %s334_s1, 1024, %s287_s15, [#allocation7], %s263_s0, %s263_s0, %s264_s7  }
  0x23   :  { %255 = dma.done.wait [#allocation4], 128  }
  0x24   :  { %256 = vsyncadd [#allocation4], 4294967168 }
  0x25   :  { %257 = dma.done.wait [#allocation7], 1024  }
  0x26   :  { %258 = vsyncadd [#allocation7], 4294966272  ;;  %v265_v0 = vmov 0.0   ;;  %v49_v1 = vld [vmem:[#allocation6 + $0x8] sm:$0xff]  ;;  %v51_v2 = vld [vmem:[#allocation6 + $0x18] sm:$0xff]  ;;  %vm58_vm0 = vcmask 261120   ;;  %v144_v14 = vlaneseq }
  0x27   :  { %126 = vmatprep.mubr.f32.mxu0 %v265_v0  ;;  %v48_v3 = vld [vmem:[#allocation6] sm:$0xff]  ;;  %v175_v4 = vpack.c.bf16 %v51_v2, %v49_v1  ;;  %v50_v5 = vld [vmem:[#allocation6 + $0x10] sm:$0xff]  ;;  %v53_v6 = vld [vmem:[#allocation6 + $0x28] sm:$0xff]  ;;  %s266_s11 = smov [#allocation8]  }
  0x28   :  { %v55_v7 = vld [vmem:[#allocation6 + $0x38] sm:$0xff]  ;;  %v177_v8 = vpack.c.bf16 %v50_v5, %v48_v3  ;;  %v52_v10 = vld [vmem:[#allocation6 + $0x20] sm:$0xff]  ;;  %v54_v11 = vld [vmem:[#allocation6 + $0x30] sm:$0xff]  ;;  %v145_v15 = vshrl.u32 %v144_v14, 7  ;;  %s164_s12 = sshll.u32 %s266_s11, 4  ;;  %s165_s12 = int_to_ptr.vmem [resolvable:$true] %s164_s12 }
  0x29   :  { %v179_v9 = vpack.c.bf16 %v55_v7, %v53_v6  ;;  %176 = vmatprep.subr.bf16.mxu0 %v175_v4  ;;  %v181_v12 = vpack.c.bf16 %v54_v11, %v52_v10  ;;  %v47_v13 = vld [vmem:[#allocation3] sm:$0xff]  ;;  %s233_s13 = scalar_lea.vmem %s165_s12, 256  ;;  %p238_p3 = scmp.lt.s32.totalorder %s165_s12, %s165_s12 }
  0x2a   :  { %178 = vmatpush1.bf16.msra.mxu0 %v177_v8  ;;  %v146_v16 = vsub.s32 0, %v145_v15  ;;  %v142_v17 = vld [vmem:[%s335_s2] sm:$0x3]  ;;  %v150_v18 = vsub.s32 1, %v145_v15  ;;  %p234_p2 = scmp.ne.s32.totalorder %s165_s12, %s233_s13  ;;  %p239_p4 = scmp.lt.s32.totalorder %s233_s13, %s233_s13 }
  0x2b   :  { %180 = vmatprep.subr.bf16.mxu0 %v179_v9 }
  0x2c   :  { %v147_v19 = vrot.slane %v142_v17, %v146_v16  ;;  %v151_v20 = vrot.slane %v142_v17, %v150_v18  ;;  %p240_p5 = por %p239_p4, %p238_p3 }
  0x2e   :  { %182 = vmatpush1.bf16.msra.mxu0 %v181_v12  ;;  %p241_p6 = pnand %p240_p5, %p234_p2 }
  0x31   :  { %174 = vmatmul.mubr.msk.f32.vlgmr.msra.gmra.mrb[0].mxu0 %vm58_vm0, %v47_v13 }
 0x104   :  { %v128_v21 = vpop.f32.mrb[0].mxu0 }
 0x105   :  { %v154_v22 = vadd.f32 %v147_v19, %v128_v21  ;;  %v130_v23 = vpop.f32.mrb[1].mxu0 }
 0x106   :  { %v155_v24 = vadd.f32 %v151_v20, %v130_v23 }
 0x107   :  { %156 = vst [vmem:[#allocation8] sm:$0xff] %v154_v22 }
 0x108   :  { %157 = vst [vmem:[#allocation8 + $0x8] sm:$0xff] %v155_v24 }
 0x109   :  { %244 = shalt.err (!%p241_p6)
}
 0x10a   :  { %s245_s15 = scalar_lea.hbm %s336_s3, 256 }
 0x10b   :  { %p246_p7 = scmp.ne.s32.totalorder %s336_s3, %s245_s15  ;;  %p249_p8 = scmp.lt.u32.totalorder %s245_s15, %s336_s3 }
 0x10d   :  { %p251_p9 = pnand %p249_p8, %p246_p7 }
 0x10f   :  { %254 = shalt.err (!%p251_p9)
}
 0x110   :  { %167 = dma.vmem_to_hbm [thread:$0]  %s165_s12, 256, %s336_s3, [#allocation5]  }
 0x111   :  { %259 = dma.done.wait [#allocation5], 256  }
 0x112   :  { %260 = vsyncadd [#allocation5], 4294967040 }
 0x113   :  { %171 = vsyncpa [#allocation4], 1 }
 0x114   :  { %172 = vsyncpa [#allocation7], 1 }
 0x115   :  { %173 = vsyncpa [#allocation5], 1 }

</bundles_post_ra>
